<compile_context>
chip_gen: v6e
topology: v6e:2x2x1
jax: 0.10.0
libtpu: 0.0.40
codegen_flags: <defaults>
</compile_context>

<pallas_src>
import jax
import jax.numpy as jnp
from jax.experimental import pallas as pl
from jax.experimental.pallas import tpu as pltpu


def _round_up(x: int, m: int) -> int:
    return ((x + m - 1) // m) * m


def _cdiv(a: int, b: int) -> int:
    return -(-a // b)


def _mlp_kernel(x_ref, w1_ref, b1_ref, w2_ref, b2_ref, o_ref):
    # fc1: [TILE_B, F] @ [F, H_pad]  (f32 accumulation on the MXU)
    h = jnp.dot(x_ref[...], w1_ref[...], preferred_element_type=jnp.float32)
    # bias + ReLU on the VPU (f32)
    h = jnp.maximum(h + b1_ref[...], 0.0)
    # fc2: [TILE_B, H_pad] @ [H_pad, C]; cast keeps the bf16 path MXU-native
    h = h.astype(w2_ref.dtype)
    out = jnp.dot(h, w2_ref[...], preferred_element_type=jnp.float32)
    o_ref[...] = (out + b2_ref[...]).astype(o_ref.dtype)


def prepare_params(w1, b1, w2, b2, *, compute_dtype=jnp.float32):
    """One-time parameter prep (do NOT call per forward).

    torch layout in (w1: [H, F], b1: [H], w2: [C, H], b2: [C]) ->
    [in, out] layouts, hidden dim zero-padded to a multiple of 128.
    F (input features) and C (classes) are left unpadded.
    """
    H, F = w1.shape
    C = w2.shape[0]
    H_pad = _round_up(H, 128)

    w1_p = jnp.zeros((F, H_pad), compute_dtype).at[:, :H].set(
        w1.T.astype(compute_dtype))
    b1_p = jnp.zeros((1, H_pad), jnp.float32).at[0, :H].set(
        b1.astype(jnp.float32))
    w2_p = jnp.zeros((H_pad, C), compute_dtype).at[:H, :].set(
        w2.T.astype(compute_dtype))
    b2_p = b2.astype(jnp.float32).reshape(1, C)
    return (w1_p, b1_p, w2_p, b2_p)


_MAX_TILE_B = 512  # ~85% of HBM roofline for mem-bound tiles (v6e measurement)


def _choose_tile(B: int) -> int:
    if B <= 8:
        return _round_up(max(B, 1), 8)
    # >= 2 grid steps so "parallel" batch axis shards across v7x's 2 TCs;
    # remainder-aware tile so B_pad overshoots B by at most a few sublane rows
    # (e.g. B=257 -> TILE_B=136, B_pad=272, not 512).
    n_steps = max(_cdiv(B, _MAX_TILE_B), 2)
    return _round_up(_cdiv(B, n_steps), 8)


@jax.jit
def _forward_impl(x, w1_p, b1_p, w2_p, b2_p):
    B, F = x.shape
    F_w, H_pad = w1_p.shape
    C = w2_p.shape[1]
    assert F == F_w, "input feature dim mismatch with prepared W1"

    compute_dtype = w1_p.dtype
    x = x.astype(compute_dtype)

    TILE_B = _choose_tile(B)
    n_steps = _cdiv(B, TILE_B)
    B_pad = n_steps * TILE_B
    if B_pad != B:
        # Tiny batch-only pad (no F inflation); padded rows sliced off below.
        x = jnp.pad(x, ((0, B_pad - B), (0, 0)))

    itemsize = jnp.dtype(compute_dtype).itemsize
    flops = 2 * B_pad * H_pad * (F + C)
    bytes_accessed = (itemsize * (B_pad * F + F * H_pad + H_pad * C)
                      + 4 * (H_pad + C + B_pad * C))

    # NOTE: weights here are tiny (~tens of KiB) so whole-weight VMEM
    # residency with default double-buffering is safe on v5e/v6e/v7x.  If the
    # model grows to multi-MiB weights, add pipeline_mode=pl.Buffered(1) to
    # the weight/bias specs + CompilerParams(vmem_limit_bytes=...), and past
    # ~24 MiB switch to a K-tiled "arbitrary" grid axis with a VMEM accumulator.
    out = pl.pallas_call(
        _mlp_kernel,
        out_shape=jax.ShapeDtypeStruct((B_pad, C), jnp.float32),
        grid=(n_steps,),
        in_specs=[
            pl.BlockSpec((TILE_B, F), lambda i: (i, 0)),   # x: streamed, no F pad
            pl.BlockSpec((F, H_pad), lambda i: (0, 0)),    # W1: VMEM-resident
            pl.BlockSpec((1, H_pad), lambda i: (0, 0)),    # b1: resident
            pl.BlockSpec((H_pad, C), lambda i: (0, 0)),    # W2: resident, no C pad
            pl.BlockSpec((1, C), lambda i: (0, 0)),        # b2: resident
        ],
        # Output is exactly C lanes wide: writes only B*C logits (no 128-wide
        # writeback inflation, no [:, :C] slice kernel afterwards).
        out_specs=pl.BlockSpec((TILE_B, C), lambda i: (i, 0)),
        compiler_params=pltpu.CompilerParams(
            dimension_semantics=("parallel",)),
        cost_estimate=pl.CostEstimate(
            flops=flops, transcendentals=0, bytes_accessed=bytes_accessed),
    )(x, w1_p, b1_p, w2_p, b2_p)

    return out if B_pad == B else out[:B]


def categorical_nn_forward(x, prepared_params):
    """x: [B, F]; prepared_params from prepare_params (built once)."""
    w1_p, b1_p, w2_p, b2_p = prepared_params
    return _forward_impl(x, w1_p, b1_p, w2_p, b2_p)


def _torch_linear_init(key, out_features, in_features):
    """Deterministic init mimicking torch.nn.Linear (U(-k, k), k=1/sqrt(fan_in))."""
    k = 1.0 / jnp.sqrt(jnp.float32(in_features))
    kw, kb = jax.random.split(key)
    w = jax.random.uniform(kw, (out_features, in_features),
                           dtype=jnp.float32, minval=-k, maxval=k)
    b = jax.random.uniform(kb, (out_features,),
                           dtype=jnp.float32, minval=-k, maxval=k)
    return w, b


if __name__ == "__main__":
    # Small synthetic shapes consistent with the module:
    #   input_size = X.shape[1], num_classes = y.shape[1],
    #   hidden_size = (input_size + num_classes) // 2
    batch = 8
    input_size = 56
    num_classes = 8
    hidden_size = (input_size + num_classes) // 2  # = 32

    key = jax.random.PRNGKey(0)
    kx, k1, k2 = jax.random.split(key, 3)

    x = jax.random.normal(kx, (batch, input_size), dtype=jnp.float32)
    w1, b1 = _torch_linear_init(k1, hidden_size, input_size)
    w2, b2 = _torch_linear_init(k2, num_classes, hidden_size)

    # One-time parameter preparation (transpose + hidden pad), off the hot path.
    params = prepare_params(w1, b1, w2, b2)

    out = jax.block_until_ready(categorical_nn_forward(x, params))

    # Pure-JAX reference of the same math (fc1 -> relu -> fc2).
    ref = jnp.maximum(x @ w1.T + b1, 0.0) @ w2.T + b2
    assert out.shape == (batch, num_classes)
    assert jnp.allclose(out, ref, atol=1e-5, rtol=1e-5)

    # Optional bf16 fast path (f32 accumulation) — loose tolerance vs f32 ref.
    params_bf16 = prepare_params(w1, b1, w2, b2, compute_dtype=jnp.bfloat16)
    out_bf16 = jax.block_until_ready(categorical_nn_forward(x, params_bf16))
    assert out_bf16.shape == (batch, num_classes)
    assert jnp.allclose(out_bf16, ref, atol=1e-1, rtol=1e-1)

    print("KERNEL_OK")
</pallas_src>

<mosaic_0001>
module attributes {stable_mosaic.version = 11 : i64} {
  func.func @_mlp_kernel(%arg0: i32, %arg1: memref<8x56xf32, #tpu.memory_space<vmem>>, %arg2: memref<56x128xf32, #tpu.memory_space<vmem>>, %arg3: memref<1x128xf32, #tpu.memory_space<vmem>>, %arg4: memref<128x8xf32, #tpu.memory_space<vmem>>, %arg5: memref<1x8xf32, #tpu.memory_space<vmem>>, %arg6: memref<8x8xf32, #tpu.memory_space<vmem>>) attributes {dimension_semantics = [#tpu.dimension_semantics<parallel>], iteration_bounds = array<i64: 1>, scalar_prefetch = 0 : i64, scratch_operands = 0 : i64, tpu.core_type = #tpu.core_type<tc>, window_params = [{transform_indices = @transform_0, window_bounds = array<i64: 8, 56>}, {pipeline_mode = #tpu.pipeline_mode<synchronous>, transform_indices = @transform_1, window_bounds = array<i64: 56, 128>}, {pipeline_mode = #tpu.pipeline_mode<synchronous>, transform_indices = @transform_2, window_bounds = array<i64: 1, 128>}, {pipeline_mode = #tpu.pipeline_mode<synchronous>, transform_indices = @transform_3, window_bounds = array<i64: 128, 8>}, {pipeline_mode = #tpu.pipeline_mode<synchronous>, transform_indices = @transform_4, window_bounds = array<i64: 1, 8>}, {transform_indices = @transform_5, window_bounds = array<i64: 8, 8>}]} {
    %c0 = arith.constant 0 : index
    %c0_0 = arith.constant 0 : index
    %0 = vector.load %arg1[%c0, %c0_0] : memref<8x56xf32, #tpu.memory_space<vmem>>, vector<8x56xf32>
    %c0_1 = arith.constant 0 : index
    %c0_2 = arith.constant 0 : index
    %1 = vector.load %arg2[%c0_1, %c0_2] : memref<56x128xf32, #tpu.memory_space<vmem>>, vector<56x128xf32>
    %cst = arith.constant dense<0.000000e+00> : vector<8x128xf32>
    %2 = tpu.matmul %0, %1, %cst {dimension_numbers = #tpu.dot_dimension_numbers<[1], [0], [0], [1], [0, 0, 1, 1], [], []>} : vector<8x56xf32>, vector<56x128xf32>, vector<8x128xf32> -> vector<8x128xf32>
    %c0_3 = arith.constant 0 : index
    %c0_4 = arith.constant 0 : index
    %3 = vector.load %arg3[%c0_3, %c0_4] : memref<1x128xf32, #tpu.memory_space<vmem>>, vector<1x128xf32>
    %4 = vector.broadcast %3 : vector<1x128xf32> to vector<8x128xf32>
    %5 = arith.addf %2, %4 : vector<8x128xf32>
    %cst_5 = arith.constant 0.000000e+00 : f32
    %6 = vector.broadcast %cst_5 : f32 to vector<8x128xf32>
    %7 = arith.maximumf %5, %6 : vector<8x128xf32>
    %c0_6 = arith.constant 0 : index
    %c0_7 = arith.constant 0 : index
    %8 = vector.load %arg4[%c0_6, %c0_7] : memref<128x8xf32, #tpu.memory_space<vmem>>, vector<128x8xf32>
    %cst_8 = arith.constant dense<0.000000e+00> : vector<8x8xf32>
    %9 = tpu.matmul %7, %8, %cst_8 {dimension_numbers = #tpu.dot_dimension_numbers<[1], [0], [0], [1], [0, 0, 1, 1], [], []>} : vector<8x128xf32>, vector<128x8xf32>, vector<8x8xf32> -> vector<8x8xf32>
    %c0_9 = arith.constant 0 : index
    %c0_10 = arith.constant 0 : index
    %10 = vector.load %arg5[%c0_9, %c0_10] : memref<1x8xf32, #tpu.memory_space<vmem>>, vector<1x8xf32>
    %11 = vector.broadcast %10 : vector<1x8xf32> to vector<8x8xf32>
    %12 = arith.addf %9, %11 : vector<8x8xf32>
    %c0_11 = arith.constant 0 : index
    %c0_12 = arith.constant 0 : index
    %13 = vector.load %arg6[%c0_11, %c0_12] : memref<8x8xf32, #tpu.memory_space<vmem>>, vector<8x8xf32>
    tpu.vector_store %arg6[%c0_11, %c0_12], %12 {strides = array<i32>} : memref<8x8xf32, #tpu.memory_space<vmem>>, vector<8x8xf32>,
    return
  }
  func.func @transform_0(%arg0: i32) -> (i32, i32) {
    %c0_i32 = arith.constant 0 : i32
    %c0_i32_0 = arith.constant 0 : i32
    return %arg0, %c0_i32 : i32, i32
  }
  func.func @transform_1(%arg0: i32) -> (i32, i32) {
    %c0_i32 = arith.constant 0 : i32
    %c0_i32_0 = arith.constant 0 : i32
    %c0_i32_1 = arith.constant 0 : i32
    return %c0_i32, %c0_i32_0 : i32, i32
  }
  func.func @transform_2(%arg0: i32) -> (i32, i32) {
    %c0_i32 = arith.constant 0 : i32
    %c0_i32_0 = arith.constant 0 : i32
    %c0_i32_1 = arith.constant 0 : i32
    return %c0_i32, %c0_i32_0 : i32, i32
  }
  func.func @transform_3(%arg0: i32) -> (i32, i32) {
    %c0_i32 = arith.constant 0 : i32
    %c0_i32_0 = arith.constant 0 : i32
    %c0_i32_1 = arith.constant 0 : i32
    return %c0_i32, %c0_i32_0 : i32, i32
  }
  func.func @transform_4(%arg0: i32) -> (i32, i32) {
    %c0_i32 = arith.constant 0 : i32
    %c0_i32_0 = arith.constant 0 : i32
    %c0_i32_1 = arith.constant 0 : i32
    return %c0_i32, %c0_i32_0 : i32, i32
  }
  func.func @transform_5(%arg0: i32) -> (i32, i32) {
    %c0_i32 = arith.constant 0 : i32
    %c0_i32_0 = arith.constant 0 : i32
    return %arg0, %c0_i32 : i32, i32
  }
}

</mosaic_0001>

<bundles_post_ra>
// kernel: _forward_impl.1
= control target key start
LH: loop header
LB: loop body
LE: loop exit
PB: predicated region body
PF: predicated region fallthrough
CT: control target
= control target key end

     0   :  { %v325_v1 = vmov 0.0   ;;  %vm326_vm0 = vmmov 0   ;;  %s466_s0 = inlined_call_operand.vmem [shape: f32[8,56], index: 0, kind: input, shape index: {}]   ;;  %s467_s1 = inlined_call_operand.vmem [shape: f32[56,128], index: 1, kind: input, shape index: {}]   ;;  %s468_s2 = inlined_call_operand.vmem [shape: f32[1,128], index: 2, kind: input, shape index: {}]   ;;  %s469_s3 = inlined_call_operand.vmem [shape: f32[128,8], index: 3, kind: input, shape index: {}]   ;;  %s470_s4 = inlined_call_operand.vmem [shape: f32[1,8], index: 4, kind: input, shape index: {}]   ;;  %s471_s5 = inlined_call_operand.hbm [shape: f32[8,8], index: 5, kind: output, shape index: {}]  }
   0x1   :  { %v28_v0 = vld [vmem:[%s467_s1 + $0x30] sm:$0xff]  ;;  %248 = vmatprep.subr.mxu0 %v325_v1  ;;  %v27_v2 = vld [vmem:[%s467_s1 + $0x28] sm:$0xff]  ;;  %262 = vmatprep.mubr.msk.f32.mxu0 %vm326_vm0, %v325_v1  ;;  %v126_v3 = vld [vmem:[%s469_s3 + $0x78] sm:$0xff] }
   0x2   :  { %249 = vmatpush3.msra.mxu0 %v28_v0  ;;  %265 = vmatprep.subr.mxu1 %v325_v1  ;;  %v26_v4 = vld [vmem:[%s467_s1 + $0x20] sm:$0xff]  ;;  %v125_v5 = vld [vmem:[%s469_s3 + $0x70] sm:$0xff]  ;;  %v124_v6 = vld [vmem:[%s469_s3 + $0x68] sm:$0xff] }
   0x3   :  { %250 = vmatprep.subr.mxu0 %v325_v1  ;;  %266 = vmatpush3.msra.mxu1 %v126_v3  ;;  %v25_v7 = vld [vmem:[%s467_s1 + $0x18] sm:$0xff]  ;;  %v123_v8 = vld [vmem:[%s469_s3 + $0x60] sm:$0xff]  ;;  %v24_v9 = vld [vmem:[%s467_s1 + $0x10] sm:$0xff] }
   0x4   :  { %251 = vmatpush3.msra.mxu0 %v27_v2  ;;  %267 = vmatprep.subr.mxu1 %v325_v1 }
   0x5   :  { %252 = vmatprep.subr.mxu0 %v325_v1  ;;  %268 = vmatpush3.msra.mxu1 %v125_v5 }
   0x6   :  { %253 = vmatpush3.msra.mxu0 %v26_v4  ;;  %269 = vmatprep.subr.mxu1 %v325_v1 }
   0x7   :  { %254 = vmatprep.subr.mxu0 %v325_v1  ;;  %270 = vmatpush3.msra.mxu1 %v124_v6 }
   0x8   :  { %10 = vsyncpa [#allocation3], 0  ;;  %255 = vmatpush3.msra.mxu0 %v25_v7  ;;  %271 = vmatprep.subr.mxu1 %v325_v1  ;;  %v122_v10 = vld [vmem:[%s469_s3 + $0x58] sm:$0xff]  ;;  %v23_v11 = vld [vmem:[%s467_s1 + $0x8] sm:$0xff]  ;;  %vm36_vm1 = vcmask 457728   ;;  %s327_s18 = smov [#allocation2]  }
   0x9   :  { %256 = vmatprep.subr.mxu0 %v325_v1  ;;  %272 = vmatpush3.msra.mxu1 %v123_v8  ;;  %v121_v12 = vld [vmem:[%s469_s3 + $0x50] sm:$0xff]  ;;  %v22_v13 = vld [vmem:[%s467_s1] sm:$0xff]  ;;  %v120_v15 = vld [vmem:[%s469_s3 + $0x48] sm:$0xff]  ;;  %s212_s19 = sshll.u32 %s327_s18, 4  ;;  %vm204_vm2 = vcmask 64512   ;;  %s213_s19 = int_to_ptr.vmem [resolvable:$true] %s212_s19 }
   0xa   :  { %257 = vmatpush3.msra.mxu0 %v24_v9  ;;  %273 = vmatprep.subr.mxu1 %v325_v1  ;;  %v21_v14 = vld [vmem:[%s466_s0] sm:$0xff]  ;;  %v118_v17 = vld [vmem:[%s469_s3 + $0x38] sm:$0xff]  ;;  %v117_v18 = vld [vmem:[%s469_s3 + $0x30] sm:$0xff]  ;;  %p308_p1 = scmp.lt.s32.totalorder %s213_s19, %s213_s19 }
   0xb   :  { %258 = vmatprep.subr.mxu0 %v325_v1  ;;  %274 = vmatpush3.msra.mxu1 %v122_v10  ;;  %v119_v16 = vld [vmem:[%s469_s3 + $0x40] sm:$0xff]  ;;  %v116_v19 = vld [vmem:[%s469_s3 + $0x28] sm:$0xff]  ;;  %v114_v21 = vld [vmem:[%s469_s3 + $0x18] sm:$0xff] }
   0xc   :  { %259 = vmatpush3.msra.mxu0 %v23_v11  ;;  %275 = vmatprep.subr.mxu1 %v325_v1  ;;  %v115_v20 = vld [vmem:[%s469_s3 + $0x20] sm:$0xff]  ;;  %v113_v22 = vld [vmem:[%s469_s3 + $0x10] sm:$0xff]  ;;  %v112_v23 = vld [vmem:[%s469_s3 + $0x8] sm:$0xff] }
   0xd   :  { %260 = vmatprep.subr.mxu0 %v325_v1  ;;  %276 = vmatpush3.msra.mxu1 %v121_v12  ;;  %v111_v24 = vld [vmem:[%s469_s3] sm:$0xff]  ;;  %s303_s3 = scalar_lea.vmem %s213_s19, 128 }
   0xe   :  { %261 = vmatpush3.msra.mxu0 %v22_v13  ;;  %277 = vmatprep.subr.mxu1 %v325_v1  ;;  %v220_v25 = vld [vmem:[%s468_s2] ss:$0 sm:$0xff]  ;;  %p304_p0 = scmp.ne.s32.totalorder %s213_s19, %s303_s3  ;;  %p309_p2 = scmp.lt.s32.totalorder %s303_s3, %s303_s3 }
   0xf   :  { %263 = vmatmul.mubr.msk.f32.vlgmr.msra.gmra.mxu0 %vm36_vm1, %v21_v14  ;;  %278 = vmatpush3.msra.mxu1 %v120_v15  ;;  %v222_v30 = vld [vmem:[%s470_s4] ss:$0 sm:$0xff] }
  0x10   :  { %279 = vmatprep.subr.mxu1 %v325_v1  ;;  %297 = vmatprep.mubr.msk.f32.mxu1 %vm326_vm0, %v325_v1  ;;  %p310_p3 = por %p309_p2, %p308_p1 }
  0x11   :  { %280 = vmatpush3.msra.mxu1 %v119_v16 }
  0x12   :  { %281 = vmatprep.subr.mxu1 %v325_v1  ;;  %p311_p4 = pnand %p310_p3, %p304_p0 }
  0x13   :  { %282 = vmatpush3.msra.mxu1 %v118_v17 }
  0x14   :  { %283 = vmatprep.subr.mxu1 %v325_v1 }
  0x15   :  { %284 = vmatpush3.msra.mxu1 %v117_v18 }
  0x16   :  { %285 = vmatprep.subr.mxu1 %v325_v1 }
  0x17   :  { %286 = vmatpush3.msra.mxu1 %v116_v19 }
  0x18   :  { %287 = vmatprep.subr.mxu1 %v325_v1 }
  0x19   :  { %288 = vmatpush3.msra.mxu1 %v115_v20 }
  0x1a   :  { %289 = vmatprep.subr.mxu1 %v325_v1 }
  0x1b   :  { %290 = vmatpush3.msra.mxu1 %v114_v21 }
  0x1c   :  { %291 = vmatprep.subr.mxu1 %v325_v1 }
  0x1d   :  { %292 = vmatpush3.msra.mxu1 %v113_v22 }
  0x1e   :  { %293 = vmatprep.subr.mxu1 %v325_v1 }
  0x1f   :  { %294 = vmatpush3.msra.mxu1 %v112_v23 }
  0x20   :  { %295 = vmatprep.subr.mxu1 %v325_v1 }
  0x21   :  { %296 = vmatpush3.msra.mxu1 %v111_v24 }
  0xcf   :  { %v106_v26 = vpop.f32.mrf.mxu0 }
  0xd0   :  { %v107_v27 = vadd.f32 %v220_v25, %v106_v26 }
  0xd1   :  { %v264_v28 = vpop.f32.mrf.mxu0 }
  0xd2   :  { %v110_v29 = vmax.f32 %v107_v27, 0.0 }
  0xd4   :  { %298 = vmatmul.mubr.f32.vlgmr.msra.gmra.mxu1 %v110_v29 }
 0x194   :  { %v200_v31 = vpop.f32.mrf.mxu1 }
 0x195   :  { %v201_v32 = vadd.f32 %v222_v30, %v200_v31 }
 0x196   :  { %v299_v33 = vpop.f32.mrf.mxu1 }
 0x197   :  { %205 = vst.msk [vmem:[#allocation2] sm:$0xff] %vm204_vm2, %v201_v32 }
 0x198   :  { %314 = shalt.err (!%p311_p4)
}
 0x199   :  { %215 = dma.vmem_to_hbm [thread:$0]  %s213_s19, 128, %s471_s5, [#allocation3]  }
 0x19a   :  { %323 = dma.done.wait [#allocation3], 128  }
 0x19b   :  { %324 = vsyncadd [#allocation3], 4294967168 }
 0x19c   :  { %219 = vsyncpa [#allocation3], 1 }

</bundles_post_ra>
